<compile_context>
chip_gen: v7x
topology: tpu7x:2x2x1
jax: 0.10.0
libtpu: 0.0.40
codegen_flags: <defaults>
</compile_context>

<pallas_src>
import jax
import jax.numpy as jnp
from jax.experimental import pallas as pl
from jax.experimental.pallas import tpu as pltpu

LANES = 128
MAX_TILE_R = 1024      # (1024,128) f32 block = 512 KiB; 3 inputs x 2 bufs ~ 2 MiB
ROW_ALIGN = 16         # bf16 packs (16,128) per vreg -> keep rows % 16 == 0
EPS = 1e-8


# ----------------------------------------------------------------------------
# cls_loss (OHEM) kernel: grid = (phase, tile)
#   phase 0: accumulate global sums of pos_area / pos_loss / neg_loss / neg_area
#   phase 1: re-read inputs, keep negatives with neg_loss > mean, finalize.
# acc_ref rows (each an (8,128) full-vreg partial-sum buffer):
#   0 pos_num  1 pos_loss  2 neg_loss  3 neg_area
#   4 kept_neg_loss        5 kept_neg_area
#   6 broadcast of the hoisted phase-1 mean
# ----------------------------------------------------------------------------
def _ohem_cls_kernel(gt_ref, pred_ref, ig_ref, out_ref, acc_ref):
    phase = pl.program_id(0)
    t = pl.program_id(1)
    nt = pl.num_programs(1)

    tile_r = gt_ref.shape[0]
    g = tile_r // 8

    gt = gt_ref[...].astype(jnp.float32).reshape(g, 8, LANES)
    ig = ig_ref[...].astype(jnp.float32).reshape(g, 8, LANES)
    pred = pred_ref[...].reshape(g, 8, LANES)

    pos_area = gt
    neg_area = (1.0 - ig) * (1.0 - gt)
    neg_loss = -jnp.log(1.0 - pred + EPS) * neg_area

    @pl.when(jnp.logical_and(phase == 0, t == 0))
    def _():
        acc_ref[...] = jnp.zeros_like(acc_ref)

    @pl.when(phase == 0)
    def _():
        pos_loss = -jnp.log(pred + EPS) * pos_area
        acc_ref[0] += jnp.sum(pos_area, axis=0)
        acc_ref[1] += jnp.sum(pos_loss, axis=0)
        acc_ref[2] += jnp.sum(neg_loss, axis=0)
        acc_ref[3] += jnp.sum(neg_area, axis=0)

    @pl.when(phase == 1)
    def _():
        # self.ratio == 0 in the reference module, so the OHEM threshold is
        # the plain mean of neg_loss over neg_area.  Compute it once and cache
        # it (broadcast) in acc row 6 for all phase-1 tiles.
        @pl.when(t == 0)
        def _():
            mean = jnp.sum(acc_ref[2]) / jnp.sum(acc_ref[3])
            acc_ref[6] = jnp.full((8, LANES), mean, jnp.float32)

        keep = neg_loss > acc_ref[6]           # (g,8,128) vs (8,128) broadcast
        acc_ref[4] += jnp.sum(jnp.where(keep, neg_loss, 0.0), axis=0)
        acc_ref[5] += jnp.sum(jnp.where(keep, neg_area, 0.0), axis=0)

        @pl.when(t == nt - 1)
        def _():
            ohem = jnp.sum(acc_ref[1]) + jnp.sum(acc_ref[4])
            denom = jnp.sum(acc_ref[5]) + jnp.sum(acc_ref[0])
            out_ref[...] = jnp.broadcast_to(ohem / denom, (1, LANES))


# ----------------------------------------------------------------------------
# rho / theta loss kernel: single-pass masked global reductions.
# acc rows: 0 sum(rho_map*mask)  1 sum(sin(|dtheta|*mask/2))  2 sum(mask)
# ----------------------------------------------------------------------------
def _rho_theta_kernel(mask_ref, rho_ref, prho_ref, th_ref, pth_ref,
                      rho_out, th_out, acc_ref):
    t = pl.program_id(0)
    nt = pl.num_programs(0)

    tile_r = mask_ref.shape[0]
    g = tile_r // 8

    mask = mask_ref[...].astype(jnp.float32).reshape(g, 8, LANES)
    rho = rho_ref[...].reshape(g, 8, LANES)
    prho = prho_ref[...].reshape(g, 8, LANES)
    th = th_ref[...].reshape(g, 8, LANES)
    pth = pth_ref[...].reshape(g, 8, LANES)

    rho_map = -jnp.log(jnp.minimum(prho, rho) /
                       (jnp.maximum(prho, rho) + EPS) + EPS)
    theta_map = jnp.sin(jnp.abs(pth - th) * mask * 0.5)

    @pl.when(t == 0)
    def _():
        acc_ref[...] = jnp.zeros_like(acc_ref)

    acc_ref[0] += jnp.sum(rho_map * mask, axis=0)
    acc_ref[1] += jnp.sum(theta_map, axis=0)
    acc_ref[2] += jnp.sum(mask, axis=0)

    @pl.when(t == nt - 1)
    def _():
        denom = jnp.sum(acc_ref[2]) + EPS
        rho_out[...] = jnp.broadcast_to(jnp.sum(acc_ref[0]) / denom, (1, LANES))
        th_out[...] = jnp.broadcast_to(jnp.sum(acc_ref[1]) / denom, (1, LANES))


# ----------------------------------------------------------------------------
# Host-side helpers
# ----------------------------------------------------------------------------
def _tiling(n):
    """rows padded to a multiple of tile_r; tile_r <= MAX_TILE_R, % 16 == 0."""
    rows = -(-n // LANES)
    rows = -(-rows // ROW_ALIGN) * ROW_ALIGN
    nt = -(-rows // MAX_TILE_R)
    tile_r = -(-rows // nt)
    tile_r = -(-tile_r // ROW_ALIGN) * ROW_ALIGN
    return nt * tile_r, tile_r, nt


def _flatten_pad(x, rows_padded, fill, dtype):
    x = jnp.ravel(x).astype(dtype)
    pad = rows_padded * LANES - x.shape[0]
    if pad:
        # TODO(synk): replace the host-side pad copy with a scalar-prefetch
        # valid-count + in-kernel tail mask to avoid re-materializing inputs.
        x = jnp.concatenate([x, jnp.full((pad,), fill, dtype)])
    return x.reshape(rows_padded, LANES)


def ohem_cls_loss(gt_score, pred_score, ignore):
    """Pallas implementation of cls_loss.forward (ratio == 0)."""
    rows_padded, tile_r, nt = _tiling(gt_score.size)

    gt = _flatten_pad(gt_score, rows_padded, 0.0, jnp.bfloat16)
    ig = _flatten_pad(ignore, rows_padded, 1.0, jnp.bfloat16)
    pred = _flatten_pad(pred_score, rows_padded, 0.5, jnp.float32)

    in_spec = pl.BlockSpec((tile_r, LANES), lambda p, t: (t, 0))

    # TODO(synk): for inputs whose neg_loss/neg_area fit VMEM, cache them in
    # phase 0 to skip the second HBM pass; on v7x also split the tile axis
    # across both TensorCores with per-core partial sums.
    out = pl.pallas_call(
        _ohem_cls_kernel,
        out_shape=jax.ShapeDtypeStruct((1, LANES), jnp.float32),
        grid_spec=pltpu.PrefetchScalarGridSpec(
            num_scalar_prefetch=0,
            grid=(2, nt),
            in_specs=[in_spec, in_spec, in_spec],
            out_specs=pl.BlockSpec((1, LANES), lambda p, t: (0, 0)),
            scratch_shapes=[pltpu.VMEM((7, 8, LANES), jnp.float32)],
        ),
        compiler_params=pltpu.CompilerParams(
            dimension_semantics=("arbitrary", "arbitrary")),
    )(gt, pred, ig)
    return out[0, 0]


def rho_theta_loss(text, rho, pred_rho, theta, pred_theta):
    """rho / theta terms of Loss_OHEM.forward."""
    rep = rho.shape[1] // text.shape[1]
    mask = jnp.tile(text, (1, rep, 1, 1))           # mask = text.repeat(1,4,1,1)
    rows_padded, tile_r, nt = _tiling(mask.size)

    m = _flatten_pad(mask, rows_padded, 0.0, jnp.bfloat16)
    r = _flatten_pad(rho, rows_padded, 1.0, jnp.float32)
    pr = _flatten_pad(pred_rho, rows_padded, 1.0, jnp.float32)
    th = _flatten_pad(theta, rows_padded, 0.0, jnp.float32)
    pth = _flatten_pad(pred_theta, rows_padded, 0.0, jnp.float32)

    spec = pl.BlockSpec((tile_r, LANES), lambda t: (t, 0))
    out_spec = pl.BlockSpec((1, LANES), lambda t: (0, 0))

    rho_out, th_out = pl.pallas_call(
        _rho_theta_kernel,
        out_shape=(jax.ShapeDtypeStruct((1, LANES), jnp.float32),
                   jax.ShapeDtypeStruct((1, LANES), jnp.float32)),
        grid_spec=pltpu.PrefetchScalarGridSpec(
            num_scalar_prefetch=0,
            grid=(nt,),
            in_specs=[spec] * 5,
            out_specs=(out_spec, out_spec),
            scratch_shapes=[pltpu.VMEM((3, 8, LANES), jnp.float32)],
        ),
        compiler_params=pltpu.CompilerParams(
            dimension_semantics=("arbitrary",)),
    )(m, r, pr, th, pth)
    return rho_out[0, 0], th_out[0, 0]


def loss_ohem(text, ignore, rho, theta, pred_cls, pred_rho, pred_theta,
              verbose=False):
    """Pallas implementation of Loss_OHEM.forward."""
    cls = ohem_cls_loss(text, pred_cls, ignore)
    rho_l, th_l = rho_theta_loss(text, rho, pred_rho, theta, pred_theta)
    if verbose:  # mirrors the module's debug print (host-side)
        print('cls {:.5f}, rho {:.5f}, theta {:.5f}'.format(
            float(cls), float(rho_l), float(th_l)))
    return cls + rho_l + th_l


# ----------------------------------------------------------------------------
# Plain-JAX reference mirroring the PyTorch module
# ----------------------------------------------------------------------------
def loss_ohem_ref(text, ignore, rho, theta, pred_cls, pred_rho, pred_theta):
    f32 = lambda x: x.astype(jnp.float32)
    text, ignore = f32(text), f32(ignore)
    rho, theta = f32(rho), f32(theta)
    pred_cls, pred_rho, pred_theta = f32(pred_cls), f32(pred_rho), f32(pred_theta)

    pos_area = text
    neg_area = (1.0 - ignore) * (1.0 - text)
    pos_num = pos_area.sum()
    pos_loss = -jnp.log(pred_cls + EPS) * pos_area
    neg_loss = -jnp.log(1.0 - pred_cls + EPS) * neg_area
    mean = neg_loss.sum() / neg_area.sum()          # ratio == 0
    neg_area2 = jnp.where(neg_loss > mean, neg_area, 0.0)
    neg_loss2 = jnp.where(neg_loss > mean, neg_loss, 0.0)
    cls = (pos_loss.sum() + neg_loss2.sum()) / (neg_area2.sum() + pos_num)

    mask = jnp.tile(text, (1, rho.shape[1] // text.shape[1], 1, 1))
    rho_map = -jnp.log(jnp.minimum(pred_rho, rho) /
                       (jnp.maximum(pred_rho, rho) + EPS) + EPS)
    rho_loss = jnp.sum(rho_map * mask) / (jnp.sum(mask) + EPS)
    theta_loss = (jnp.sum(jnp.sin(jnp.abs(pred_theta - theta) * mask / 2)) /
                  (jnp.sum(mask) + EPS))
    return cls + rho_loss + theta_loss


if __name__ == "__main__":
    key = jax.random.PRNGKey(0)
    ks = jax.random.split(key, 7)
    B, H, W = 2, 16, 16
    cls_shape = (B, 1, H, W)     # text / ignore / pred_cls score maps
    geo_shape = (B, 4, H, W)     # rho / theta maps (mask = text.repeat(1,4,1,1))

    text = jax.random.bernoulli(ks[0], 0.3, cls_shape).astype(jnp.float32)
    ignore = jax.random.bernoulli(ks[1], 0.1, cls_shape).astype(jnp.float32)
    pred_cls = jax.random.uniform(ks[2], cls_shape, jnp.float32, 0.01, 0.99)
    rho = jax.random.uniform(ks[3], geo_shape, jnp.float32, 0.1, 2.0)
    pred_rho = jax.random.uniform(ks[4], geo_shape, jnp.float32, 0.1, 2.0)
    theta = jax.random.uniform(ks[5], geo_shape, jnp.float32, -1.0, 1.0)
    pred_theta = jax.random.uniform(ks[6], geo_shape, jnp.float32, -1.0, 1.0)

    out = jax.block_until_ready(
        loss_ohem(text, ignore, rho, theta, pred_cls, pred_rho, pred_theta))
    ref = jax.block_until_ready(
        loss_ohem_ref(text, ignore, rho, theta, pred_cls, pred_rho, pred_theta))

    assert jnp.isfinite(out), f"non-finite kernel output: {out}"
    assert jnp.allclose(out, ref, rtol=1e-4, atol=1e-5), (out, ref)
    print("KERNEL_OK")
</pallas_src>

<mosaic_0001>
module attributes {stable_mosaic.version = 11 : i64} {
  func.func @_ohem_cls_kernel(%arg0: i32, %arg1: i32, %arg2: memref<16x128xbf16, #tpu.memory_space<vmem>>, %arg3: memref<16x128xf32, #tpu.memory_space<vmem>>, %arg4: memref<16x128xbf16, #tpu.memory_space<vmem>>, %arg5: memref<1x128xf32, #tpu.memory_space<vmem>>, %arg6: memref<7x8x128xf32, #tpu.memory_space<vmem>>) attributes {dimension_semantics = [#tpu.dimension_semantics<arbitrary>, #tpu.dimension_semantics<arbitrary>], iteration_bounds = array<i64: 2, 1>, scalar_prefetch = 0 : i64, scratch_operands = 1 : i64, tpu.core_type = #tpu.core_type<tc>, window_params = [{transform_indices = @transform_0, window_bounds = array<i64: 16, 128>}, {transform_indices = @transform_1, window_bounds = array<i64: 16, 128>}, {transform_indices = @transform_2, window_bounds = array<i64: 16, 128>}, {pipeline_mode = #tpu.pipeline_mode<synchronous>, transform_indices = @transform_3, window_bounds = array<i64: 1, 128>}]} {
    %c0 = arith.constant 0 : index
    %c0_0 = arith.constant 0 : index
    %0 = vector.load %arg2[%c0, %c0_0] : memref<16x128xbf16, #tpu.memory_space<vmem>>, vector<16x128xbf16>
    %1 = arith.extf %0 : vector<16x128xbf16> to vector<16x128xf32>
    %2 = vector.shape_cast %1 : vector<16x128xf32> to vector<2x8x128xf32>
    %c0_1 = arith.constant 0 : index
    %c0_2 = arith.constant 0 : index
    %3 = vector.load %arg4[%c0_1, %c0_2] : memref<16x128xbf16, #tpu.memory_space<vmem>>, vector<16x128xbf16>
    %4 = arith.extf %3 : vector<16x128xbf16> to vector<16x128xf32>
    %5 = vector.shape_cast %4 : vector<16x128xf32> to vector<2x8x128xf32>
    %c0_3 = arith.constant 0 : index
    %c0_4 = arith.constant 0 : index
    %6 = vector.load %arg3[%c0_3, %c0_4] : memref<16x128xf32, #tpu.memory_space<vmem>>, vector<16x128xf32>
    %7 = vector.shape_cast %6 : vector<16x128xf32> to vector<2x8x128xf32>
    %cst = arith.constant 1.000000e+00 : f32
    %8 = vector.broadcast %cst : f32 to vector<2x8x128xf32>
    %9 = arith.subf %8, %5 : vector<2x8x128xf32>
    %cst_5 = arith.constant 1.000000e+00 : f32
    %10 = vector.broadcast %cst_5 : f32 to vector<2x8x128xf32>
    %11 = arith.subf %10, %2 : vector<2x8x128xf32>
    %12 = arith.mulf %9, %11 : vector<2x8x128xf32>
    %cst_6 = arith.constant 1.000000e+00 : f32
    %13 = vector.broadcast %cst_6 : f32 to vector<2x8x128xf32>
    %14 = arith.subf %13, %7 : vector<2x8x128xf32>
    %cst_7 = arith.constant 9.99999993E-9 : f32
    %15 = vector.broadcast %cst_7 : f32 to vector<2x8x128xf32>
    %16 = arith.addf %14, %15 : vector<2x8x128xf32>
    %17 = math.log %16 : vector<2x8x128xf32>
    %cst_8 = arith.constant 0.000000e+00 : f32
    %18 = vector.broadcast %cst_8 : f32 to vector<2x8x128xf32>
    %19 = arith.subf %18, %17 : vector<2x8x128xf32>
    %20 = arith.mulf %19, %12 : vector<2x8x128xf32>
    %c0_i32 = arith.constant 0 : i32
    %21 = arith.cmpi eq, %arg0, %c0_i32 : i32
    %c0_i32_9 = arith.constant 0 : i32
    %22 = arith.cmpi eq, %arg1, %c0_i32_9 : i32
    %23 = arith.andi %21, %22 : i1
    %24 = arith.extui %23 : i1 to i32
    %c0_i32_10 = arith.constant 0 : i32
    %25 = arith.cmpi ne, %24, %c0_i32_10 : i32
    scf.if %25 {
      %cst_14 = arith.constant 0.000000e+00 : f32
      %32 = vector.broadcast %cst_14 : f32 to vector<7x8x128xf32>
      %c0_15 = arith.constant 0 : index
      %c0_16 = arith.constant 0 : index
      %c0_17 = arith.constant 0 : index
      %33 = vector.load %arg6[%c0_15, %c0_16, %c0_17] : memref<7x8x128xf32, #tpu.memory_space<vmem>>, vector<7x8x128xf32>
      tpu.vector_store %arg6[%c0_15, %c0_16, %c0_17], %32 {strides = array<i32>} : memref<7x8x128xf32, #tpu.memory_space<vmem>>, vector<7x8x128xf32>,
    } else {
    }
    %c0_i32_11 = arith.constant 0 : i32
    %26 = arith.cmpi eq, %arg0, %c0_i32_11 : i32
    %27 = arith.extui %26 : i1 to i32
    %c0_i32_12 = arith.constant 0 : i32
    %28 = arith.cmpi ne, %27, %c0_i32_12 : i32
    scf.if %28 {
      %cst_14 = arith.constant 9.99999993E-9 : f32
      %32 = vector.broadcast %cst_14 : f32 to vector<2x8x128xf32>
      %33 = arith.addf %7, %32 : vector<2x8x128xf32>
      %34 = math.log %33 : vector<2x8x128xf32>
      %cst_15 = arith.constant 0.000000e+00 : f32
      %35 = vector.broadcast %cst_15 : f32 to vector<2x8x128xf32>
      %36 = arith.subf %35, %34 : vector<2x8x128xf32>
      %37 = arith.mulf %36, %2 : vector<2x8x128xf32>
      %c0_16 = arith.constant 0 : index
      %c0_17 = arith.constant 0 : index
      %c0_18 = arith.constant 0 : index
      %38 = vector.load %arg6[%c0_16, %c0_17, %c0_18] : memref<7x8x128xf32, #tpu.memory_space<vmem>>, vector<1x8x128xf32>
      %39 = vector.shape_cast %38 : vector<1x8x128xf32> to vector<8x128xf32>
      %cst_19 = arith.constant dense<0.000000e+00> : vector<8x128xf32>
      %40 = vector.multi_reduction <add>, %2, %cst_19 [0] : vector<2x8x128xf32> to vector<8x128xf32>
      %41 = arith.addf %39, %40 : vector<8x128xf32>
      %c0_20 = arith.constant 0 : index
      %c0_21 = arith.constant 0 : index
      %c0_22 = arith.constant 0 : index
      %42 = vector.load %arg6[%c0_20, %c0_21, %c0_22] : memref<7x8x128xf32, #tpu.memory_space<vmem>>, vector<1x8x128xf32>
      %43 = vector.shape_cast %42 : vector<1x8x128xf32> to vector<8x128xf32>
      %44 = vector.shape_cast %41 : vector<8x128xf32> to vector<1x8x128xf32>
      tpu.vector_store %arg6[%c0_20, %c0_21, %c0_22], %44 {strides = array<i32>} : memref<7x8x128xf32, #tpu.memory_space<vmem>>, vector<1x8x128xf32>,
      %c1 = arith.constant 1 : index
      %c0_23 = arith.constant 0 : index
      %c0_24 = arith.constant 0 : index
      %45 = vector.load %arg6[%c1, %c0_23, %c0_24] : memref<7x8x128xf32, #tpu.memory_space<vmem>>, vector<1x8x128xf32>
      %46 = vector.shape_cast %45 : vector<1x8x128xf32> to vector<8x128xf32>
      %cst_25 = arith.constant dense<0.000000e+00> : vector<8x128xf32>
      %47 = vector.multi_reduction <add>, %37, %cst_25 [0] : vector<2x8x128xf32> to vector<8x128xf32>
      %48 = arith.addf %46, %47 : vector<8x128xf32>
      %c1_26 = arith.constant 1 : index
      %c0_27 = arith.constant 0 : index
      %c0_28 = arith.constant 0 : index
      %49 = vector.load %arg6[%c1_26, %c0_27, %c0_28] : memref<7x8x128xf32, #tpu.memory_space<vmem>>, vector<1x8x128xf32>
      %50 = vector.shape_cast %49 : vector<1x8x128xf32> to vector<8x128xf32>
      %51 = vector.shape_cast %48 : vector<8x128xf32> to vector<1x8x128xf32>
      tpu.vector_store %arg6[%c1_26, %c0_27, %c0_28], %51 {strides = array<i32>} : memref<7x8x128xf32, #tpu.memory_space<vmem>>, vector<1x8x128xf32>,
      %c2 = arith.constant 2 : index
      %c0_29 = arith.constant 0 : index
      %c0_30 = arith.constant 0 : index
      %52 = vector.load %arg6[%c2, %c0_29, %c0_30] : memref<7x8x128xf32, #tpu.memory_space<vmem>>, vector<1x8x128xf32>
      %53 = vector.shape_cast %52 : vector<1x8x128xf32> to vector<8x128xf32>
      %cst_31 = arith.constant dense<0.000000e+00> : vector<8x128xf32>
      %54 = vector.multi_reduction <add>, %20, %cst_31 [0] : vector<2x8x128xf32> to vector<8x128xf32>
      %55 = arith.addf %53, %54 : vector<8x128xf32>
      %c2_32 = arith.constant 2 : index
      %c0_33 = arith.constant 0 : index
      %c0_34 = arith.constant 0 : index
      %56 = vector.load %arg6[%c2_32, %c0_33, %c0_34] : memref<7x8x128xf32, #tpu.memory_space<vmem>>, vector<1x8x128xf32>
      %57 = vector.shape_cast %56 : vector<1x8x128xf32> to vector<8x128xf32>
      %58 = vector.shape_cast %55 : vector<8x128xf32> to vector<1x8x128xf32>
      tpu.vector_store %arg6[%c2_32, %c0_33, %c0_34], %58 {strides = array<i32>} : memref<7x8x128xf32, #tpu.memory_space<vmem>>, vector<1x8x128xf32>,
      %c3 = arith.constant 3 : index
      %c0_35 = arith.constant 0 : index
      %c0_36 = arith.constant 0 : index
      %59 = vector.load %arg6[%c3, %c0_35, %c0_36] : memref<7x8x128xf32, #tpu.memory_space<vmem>>, vector<1x8x128xf32>
      %60 = vector.shape_cast %59 : vector<1x8x128xf32> to vector<8x128xf32>
      %cst_37 = arith.constant dense<0.000000e+00> : vector<8x128xf32>
      %61 = vector.multi_reduction <add>, %12, %cst_37 [0] : vector<2x8x128xf32> to vector<8x128xf32>
      %62 = arith.addf %60, %61 : vector<8x128xf32>
      %c3_38 = arith.constant 3 : index
      %c0_39 = arith.constant 0 : index
      %c0_40 = arith.constant 0 : index
      %63 = vector.load %arg6[%c3_38, %c0_39, %c0_40] : memref<7x8x128xf32, #tpu.memory_space<vmem>>, vector<1x8x128xf32>
      %64 = vector.shape_cast %63 : vector<1x8x128xf32> to vector<8x128xf32>
      %65 = vector.shape_cast %62 : vector<8x128xf32> to vector<1x8x128xf32>
      tpu.vector_store %arg6[%c3_38, %c0_39, %c0_40], %65 {strides = array<i32>} : memref<7x8x128xf32, #tpu.memory_space<vmem>>, vector<1x8x128xf32>,
    } else {
    }
    %c1_i32 = arith.constant 1 : i32
    %29 = arith.cmpi eq, %arg0, %c1_i32 : i32
    %30 = arith.extui %29 : i1 to i32
    %c0_i32_13 = arith.constant 0 : i32
    %31 = arith.cmpi ne, %30, %c0_i32_13 : i32
    scf.if %31 {
      %c0_i32_14 = arith.constant 0 : i32
      %32 = arith.cmpi eq, %arg1, %c0_i32_14 : i32
      %33 = arith.extui %32 : i1 to i32
      %c0_i32_15 = arith.constant 0 : i32
      %34 = arith.cmpi ne, %33, %c0_i32_15 : i32
      scf.if %34 {
        %c2 = arith.constant 2 : index
        %c0_34 = arith.constant 0 : index
        %c0_35 = arith.constant 0 : index
        %61 = vector.load %arg6[%c2, %c0_34, %c0_35] : memref<7x8x128xf32, #tpu.memory_space<vmem>>, vector<1x8x128xf32>
        %62 = vector.shape_cast %61 : vector<1x8x128xf32> to vector<8x128xf32>
        %63 = vector.shape_cast %62 : vector<8x128xf32> to vector<1x8x128xf32>
        %cst_36 = arith.constant dense<0.000000e+00> : vector<1xf32>
        %64 = vector.multi_reduction <add>, %63, %cst_36 [1, 2] : vector<1x8x128xf32> to vector<1xf32>
        %65 = vector.shape_cast %64 : vector<1xf32> to vector<1x1x1xf32>
        %66 = vector.extract %65[0, 0, 0] : f32 from vector<1x1x1xf32>
        %c3 = arith.constant 3 : index
        %c0_37 = arith.constant 0 : index
        %c0_38 = arith.constant 0 : index
        %67 = vector.load %arg6[%c3, %c0_37, %c0_38] : memref<7x8x128xf32, #tpu.memory_space<vmem>>, vector<1x8x128xf32>
        %68 = vector.shape_cast %67 : vector<1x8x128xf32> to vector<8x128xf32>
        %69 = vector.shape_cast %68 : vector<8x128xf32> to vector<1x8x128xf32>
        %cst_39 = arith.constant dense<0.000000e+00> : vector<1xf32>
        %70 = vector.multi_reduction <add>, %69, %cst_39 [1, 2] : vector<1x8x128xf32> to vector<1xf32>
        %71 = vector.shape_cast %70 : vector<1xf32> to vector<1x1x1xf32>
        %72 = vector.extract %71[0, 0, 0] : f32 from vector<1x1x1xf32>
        %73 = arith.divf %66, %72 : f32
        %74 = vector.broadcast %73 : f32 to vector<8x128xf32>
        %c6_40 = arith.constant 6 : index
        %c0_41 = arith.constant 0 : index
        %c0_42 = arith.constant 0 : index
        %75 = vector.load %arg6[%c6_40, %c0_41, %c0_42] : memref<7x8x128xf32, #tpu.memory_space<vmem>>, vector<1x8x128xf32>
        %76 = vector.shape_cast %75 : vector<1x8x128xf32> to vector<8x128xf32>
        %77 = vector.shape_cast %74 : vector<8x128xf32> to vector<1x8x128xf32>
        tpu.vector_store %arg6[%c6_40, %c0_41, %c0_42], %77 {strides = array<i32>} : memref<7x8x128xf32, #tpu.memory_space<vmem>>, vector<1x8x128xf32>,
      } else {
      }
      %c6 = arith.constant 6 : index
      %c0_16 = arith.constant 0 : index
      %c0_17 = arith.constant 0 : index
      %35 = vector.load %arg6[%c6, %c0_16, %c0_17] : memref<7x8x128xf32, #tpu.memory_space<vmem>>, vector<1x8x128xf32>
      %36 = vector.shape_cast %35 : vector<1x8x128xf32> to vector<8x128xf32>
      %37 = vector.shape_cast %36 : vector<8x128xf32> to vector<1x8x128xf32>
      %38 = vector.broadcast %37 : vector<1x8x128xf32> to vector<2x8x128xf32>
      %39 = arith.cmpf ogt, %20, %38 : vector<2x8x128xf32>
      %c4 = arith.constant 4 : index
      %c0_18 = arith.constant 0 : index
      %c0_19 = arith.constant 0 : index
      %40 = vector.load %arg6[%c4, %c0_18, %c0_19] : memref<7x8x128xf32, #tpu.memory_space<vmem>>, vector<1x8x128xf32>
      %41 = vector.shape_cast %40 : vector<1x8x128xf32> to vector<8x128xf32>
      %cst_20 = arith.constant 0.000000e+00 : f32
      %42 = vector.broadcast %cst_20 : f32 to vector<2x8x128xf32>
      %43 = arith.select %39, %20, %42 : vector<2x8x128xi1>, vector<2x8x128xf32>
      %cst_21 = arith.constant dense<0.000000e+00> : vector<8x128xf32>
      %44 = vector.multi_reduction <add>, %43, %cst_21 [0] : vector<2x8x128xf32> to vector<8x128xf32>
      %45 = arith.addf %41, %44 : vector<8x128xf32>
      %c4_22 = arith.constant 4 : index
      %c0_23 = arith.constant 0 : index
      %c0_24 = arith.constant 0 : index
      %46 = vector.load %arg6[%c4_22, %c0_23, %c0_24] : memref<7x8x128xf32, #tpu.memory_space<vmem>>, vector<1x8x128xf32>
      %47 = vector.shape_cast %46 : vector<1x8x128xf32> to vector<8x128xf32>
      %48 = vector.shape_cast %45 : vector<8x128xf32> to vector<1x8x128xf32>
      tpu.vector_store %arg6[%c4_22, %c0_23, %c0_24], %48 {strides = array<i32>} : memref<7x8x128xf32, #tpu.memory_space<vmem>>, vector<1x8x128xf32>,
      %c5 = arith.constant 5 : index
      %c0_25 = arith.constant 0 : index
      %c0_26 = arith.constant 0 : index
      %49 = vector.load %arg6[%c5, %c0_25, %c0_26] : memref<7x8x128xf32, #tpu.memory_space<vmem>>, vector<1x8x128xf32>
      %50 = vector.shape_cast %49 : vector<1x8x128xf32> to vector<8x128xf32>
      %cst_27 = arith.constant 0.000000e+00 : f32
      %51 = vector.broadcast %cst_27 : f32 to vector<2x8x128xf32>
      %52 = arith.select %39, %12, %51 : vector<2x8x128xi1>, vector<2x8x128xf32>
      %cst_28 = arith.constant dense<0.000000e+00> : vector<8x128xf32>
      %53 = vector.multi_reduction <add>, %52, %cst_28 [0] : vector<2x8x128xf32> to vector<8x128xf32>
      %54 = arith.addf %50, %53 : vector<8x128xf32>
      %c5_29 = arith.constant 5 : index
      %c0_30 = arith.constant 0 : index
      %c0_31 = arith.constant 0 : index
      %55 = vector.load %arg6[%c5_29, %c0_30, %c0_31] : memref<7x8x128xf32, #tpu.memory_space<vmem>>, vector<1x8x128xf32>
      %56 = vector.shape_cast %55 : vector<1x8x128xf32> to vector<8x128xf32>
      %57 = vector.shape_cast %54 : vector<8x128xf32> to vector<1x8x128xf32>
      tpu.vector_store %arg6[%c5_29, %c0_30, %c0_31], %57 {strides = array<i32>} : memref<7x8x128xf32, #tpu.memory_space<vmem>>, vector<1x8x128xf32>,
      %c0_i32_32 = arith.constant 0 : i32
      %58 = arith.cmpi eq, %arg1, %c0_i32_32 : i32
      %59 = arith.extui %58 : i1 to i32
      %c0_i32_33 = arith.constant 0 : i32
      %60 = arith.cmpi ne, %59, %c0_i32_33 : i32
      scf.if %60 {
        %c1 = arith.constant 1 : index
        %c0_34 = arith.constant 0 : index
        %c0_35 = arith.constant 0 : index
        %61 = vector.load %arg6[%c1, %c0_34, %c0_35] : memref<7x8x128xf32, #tpu.memory_space<vmem>>, vector<1x8x128xf32>
        %62 = vector.shape_cast %61 : vector<1x8x128xf32> to vector<8x128xf32>
        %63 = vector.shape_cast %62 : vector<8x128xf32> to vector<1x8x128xf32>
        %cst_36 = arith.constant dense<0.000000e+00> : vector<1xf32>
        %64 = vector.multi_reduction <add>, %63, %cst_36 [1, 2] : vector<1x8x128xf32> to vector<1xf32>
        %65 = vector.shape_cast %64 : vector<1xf32> to vector<1x1x1xf32>
        %66 = vector.extract %65[0, 0, 0] : f32 from vector<1x1x1xf32>
        %c4_37 = arith.constant 4 : index
        %c0_38 = arith.constant 0 : index
        %c0_39 = arith.constant 0 : index
        %67 = vector.load %arg6[%c4_37, %c0_38, %c0_39] : memref<7x8x128xf32, #tpu.memory_space<vmem>>, vector<1x8x128xf32>
        %68 = vector.shape_cast %67 : vector<1x8x128xf32> to vector<8x128xf32>
        %69 = vector.shape_cast %68 : vector<8x128xf32> to vector<1x8x128xf32>
        %cst_40 = arith.constant dense<0.000000e+00> : vector<1xf32>
        %70 = vector.multi_reduction <add>, %69, %cst_40 [1, 2] : vector<1x8x128xf32> to vector<1xf32>
        %71 = vector.shape_cast %70 : vector<1xf32> to vector<1x1x1xf32>
        %72 = vector.extract %71[0, 0, 0] : f32 from vector<1x1x1xf32>
        %73 = arith.addf %66, %72 : f32
        %c5_41 = arith.constant 5 : index
        %c0_42 = arith.constant 0 : index
        %c0_43 = arith.constant 0 : index
        %74 = vector.load %arg6[%c5_41, %c0_42, %c0_43] : memref<7x8x128xf32, #tpu.memory_space<vmem>>, vector<1x8x128xf32>
        %75 = vector.shape_cast %74 : vector<1x8x128xf32> to vector<8x128xf32>
        %76 = vector.shape_cast %75 : vector<8x128xf32> to vector<1x8x128xf32>
        %cst_44 = arith.constant dense<0.000000e+00> : vector<1xf32>
        %77 = vector.multi_reduction <add>, %76, %cst_44 [1, 2] : vector<1x8x128xf32> to vector<1xf32>
        %78 = vector.shape_cast %77 : vector<1xf32> to vector<1x1x1xf32>
        %79 = vector.extract %78[0, 0, 0] : f32 from vector<1x1x1xf32>
        %c0_45 = arith.constant 0 : index
        %c0_46 = arith.constant 0 : index
        %c0_47 = arith.constant 0 : index
        %80 = vector.load %arg6[%c0_45, %c0_46, %c0_47] : memref<7x8x128xf32, #tpu.memory_space<vmem>>, vector<1x8x128xf32>
        %81 = vector.shape_cast %80 : vector<1x8x128xf32> to vector<8x128xf32>
        %82 = vector.shape_cast %81 : vector<8x128xf32> to vector<1x8x128xf32>
        %cst_48 = arith.constant dense<0.000000e+00> : vector<1xf32>
        %83 = vector.multi_reduction <add>, %82, %cst_48 [1, 2] : vector<1x8x128xf32> to vector<1xf32>
        %84 = vector.shape_cast %83 : vector<1xf32> to vector<1x1x1xf32>
        %85 = vector.extract %84[0, 0, 0] : f32 from vector<1x1x1xf32>
        %86 = arith.addf %79, %85 : f32
        %87 = arith.divf %73, %86 : f32
        %88 = vector.broadcast %87 : f32 to vector<1x128xf32>
        %c0_49 = arith.constant 0 : index
        %c0_50 = arith.constant 0 : index
        %89 = vector.load %arg5[%c0_49, %c0_50] : memref<1x128xf32, #tpu.memory_space<vmem>>, vector<1x128xf32>
        tpu.vector_store %arg5[%c0_49, %c0_50], %88 {strides = array<i32>} : memref<1x128xf32, #tpu.memory_space<vmem>>, vector<1x128xf32>,
      } else {
      }
    } else {
    }
    return
  }
  func.func @transform_0(%arg0: i32, %arg1: i32) -> (i32, i32) {
    %c0_i32 = arith.constant 0 : i32
    %c0_i32_0 = arith.constant 0 : i32
    return %arg1, %c0_i32 : i32, i32
  }
  func.func @transform_1(%arg0: i32, %arg1: i32) -> (i32, i32) {
    %c0_i32 = arith.constant 0 : i32
    %c0_i32_0 = arith.constant 0 : i32
    return %arg1, %c0_i32 : i32, i32
  }
  func.func @transform_2(%arg0: i32, %arg1: i32) -> (i32, i32) {
    %c0_i32 = arith.constant 0 : i32
    %c0_i32_0 = arith.constant 0 : i32
    return %arg1, %c0_i32 : i32, i32
  }
  func.func @transform_3(%arg0: i32, %arg1: i32) -> (i32, i32) {
    %c0_i32 = arith.constant 0 : i32
    %c0_i32_0 = arith.constant 0 : i32
    %c0_i32_1 = arith.constant 0 : i32
    return %c0_i32, %c0_i32_0 : i32, i32
  }
}

</mosaic_0001>

<bundles_post_ra>
// kernel: tpu_custom_call.1
= control target key start
LH: loop header
LB: loop body
LE: loop exit
PB: predicated region body
PF: predicated region fallthrough
CT: control target
= control target key end

     0   :  { %8 = vsyncpa [#allocation4], 0  ;;  %s958_s0 = inlined_call_operand.hbm [shape: bf16[16,128], index: 0, kind: input, shape index: {}]   ;;  %s959_s1 = inlined_call_operand.hbm [shape: f32[16,128], index: 1, kind: input, shape index: {}]   ;;  %s960_s2 = inlined_call_operand.hbm [shape: bf16[16,128], index: 2, kind: input, shape index: {}]   ;;  %s961_s3 = inlined_call_operand.hbm [shape: f32[1,128], index: 3, kind: output, shape index: {}]  }
   0x1   :  { %9 = vsyncpa [#allocation7], 0 }
   0x2   :  { %10 = vsyncpa [#allocation5], 0  ;;  %s774_s12 = smov 0   ;;  %s776_s13 = smov 0  }
   0x3   :  { %s778_s14 = smov 0  }
   0x4 LB: > { %s745_s15 = smov [#allocation6]   ;;  %s479_s17 = sadd.s32 4294967295, %s743_s14   ;;  %s743_s14 = sphi %s778_s14, %s16_s14   ;;  %s739_s13 = sphi %s776_s13, %s974_s13   ;;  %s735_s12 = sphi %s774_s12, %s973_s12  }
   0x5   : > { %s163_s16 = sshll.u32 %s745_s15, 4  ;;  %p480_p0 = scmp.ge.s32.totalorder %s743_s14, 1  ;;  %s798_s16 = int_to_ptr.vmem [resolvable:$true] %s163_s16 }
   0x6   : > { %p132_p1 = scmp.lt.s32.totalorder %s743_s14, 3  ;;  %p794_p2 = scmp.eq.s32.totalorder %s479_s17, 0 }
   0x7   : > { %s28_s21 = sadd.s32 1, %s739_s13  ;;  %s746_s23 = smov [#allocation3]  }
   0x8   : > { %s965_s18 = scalar_select %p794_p2, 1, 0 }
   0x9   : > { %p800_p3 = pnand %p480_p0, %p132_p1  ;;  %p813_p6 = scmp.ge.s32.totalorder %s28_s21, 2 }
   0xa   : > { %s147_s24 = sshll.u32 %s746_s23, 4  ;;  %s599_s27 = scalar_lea.hbm %s959_s1, 256  ;;  %s148_s24 = int_to_ptr.vmem [resolvable:$true] %s147_s24 }
   0xb   : > { %s966_s19 = scalar_select %p800_p3, 1, 0 }
   0xc   : > { %p536_p4 = pneg %p800_p3  ;;  %p600_p7 = scmp.ne.s32.totalorder %s959_s1, %s599_s27 }
   0xd   : > { %p606_p11 = scmp.lt.u32.totalorder %s599_s27, %s959_s1 }
   0xe   : > { %p808_p5 = pnand %p794_p2, %p536_p4 }
  0x10   : > { %p825_p8 = pneg %p808_p5 }
  0x12   : > { %p602_p9 = pnand %p825_p8, %p600_p7 }
  0x14   : > { %p603_p10 = pneg %p602_p9 }
  0x16   : > { %p608_p12 = pnand %p606_p11, %p603_p10 }
  0x18   : > { %611 = shalt.err (!%p608_p12)
}
  0x19   : > { %s612_s6 = scalar_lea.vmem %s798_s16, 256  ;;  %p620_p4 = scmp.lt.s32.totalorder %s798_s16, %s798_s16 }
  0x1a   : > { %p613_p13 = scmp.ne.s32.totalorder %s798_s16, %s612_s6  ;;  %p621_p2 = scmp.lt.s32.totalorder %s612_s6, %s612_s6 }
  0x1c   : > { %p615_p0 = pnand %p613_p13, %p825_p8  ;;  %p622_p7 = por %p621_p2, %p620_p4 }
  0x1e   : > { %p616_p1 = pneg %p615_p0 }
  0x20   : > { %p623_p9 = pnand %p622_p7, %p616_p1 }
  0x22   : > { %626 = shalt.err (!%p623_p9)
}
  0x23   : > { %s747_s7 = smov 128   ;;  %s748_s8 = smov 8  }
  0x24   : > { %542 = dma.hbm_to_vmem [thread:$0]  (!%p808_p5), %s959_s1, 256, %s798_s16, [#allocation7], %s747_s7, %s747_s7, %s748_s8  }
  0x25   : > { %s976_s21 = smov (%p813_p6, %s28_s21), 0  ;;  %s627_s23 = scalar_lea.hbm %s958_s0, 128 }
  0x26   : > { %p628_p2 = scmp.ne.s32.totalorder %s958_s0, %s627_s23  ;;  %p634_p12 = scmp.lt.u32.totalorder %s627_s23, %s958_s0 }
  0x28   : > { %p630_p10 = pnand %p628_p2, %p825_p8 }
  0x2a   : > { %p631_p11 = pneg %p630_p10 }
  0x2c   : > { %p636_p13 = pnand %p634_p12, %p631_p11 }
  0x2e   : > { %639 = shalt.err (!%p636_p13)
}
  0x2f   : > { %s640_s16 = scalar_lea.vmem %s148_s24, 128  ;;  %p648_p4 = scmp.lt.s32.totalorder %s148_s24, %s148_s24 }
  0x30   : > { %p641_p6 = scmp.ne.s32.totalorder %s148_s24, %s640_s16  ;;  %p649_p7 = scmp.lt.s32.totalorder %s640_s16, %s640_s16 }
  0x32   : > { %p643_p0 = pnand %p641_p6, %p825_p8  ;;  %p650_p9 = por %p649_p7, %p648_p4 }
  0x34   : > { %p644_p1 = pneg %p643_p0 }
  0x36   : > { %p651_p3 = pnand %p650_p9, %p644_p1 }
  0x38   : > { %654 = shalt.err (!%p651_p3)
}
  0x39   : > { %s749_s22 = smov 64   ;;  %s750_s29 = smov 4  }
  0x3a   : > { %539 = dma.hbm_to_vmem [thread:$0]  (!%p808_p5), %s958_s0, 128, %s148_s24, [#allocation4], %s749_s22, %s749_s22, %s750_s29  }
  0x3b   : > { %s751_s6 = smov [#allocation8]   ;;  %s655_s10 = scalar_lea.hbm %s960_s2, 128 }
  0x3c   : > { %s179_s7 = sshll.u32 %s751_s6, 4  ;;  %p656_p3 = scmp.ne.s32.totalorder %s960_s2, %s655_s10  ;;  %s180_s7 = int_to_ptr.vmem [resolvable:$true] %s179_s7 }
  0x3d   : > { %p662_p11 = scmp.lt.u32.totalorder %s655_s10, %s960_s2 }
  0x3e   : > { %p658_p2 = pnand %p656_p3, %p825_p8 }
  0x40   : > { %p659_p10 = pneg %p658_p2 }
  0x42   : > { %p664_p12 = pnand %p662_p11, %p659_p10 }
  0x44   : > { %667 = shalt.err (!%p664_p12)
}
  0x45   : > { %s668_s24 = scalar_lea.vmem %s180_s7, 128  ;;  %p676_p1 = scmp.lt.s32.totalorder %s180_s7, %s180_s7 }
  0x46   : > { %p669_p13 = scmp.ne.s32.totalorder %s180_s7, %s668_s24  ;;  %p677_p4 = scmp.lt.s32.totalorder %s668_s24, %s668_s24 }
  0x48   : > { %p671_p6 = pnand %p669_p13, %p825_p8  ;;  %p678_p7 = por %p677_p4, %p676_p1 }
  0x4a   : > { %p672_p0 = pneg %p671_p6 }
  0x4c   : > { %p679_p9 = pnand %p678_p7, %p672_p0 }
  0x4e   : > { %682 = shalt.err (!%p679_p9)
}
  0x4f   : > { %545 = dma.hbm_to_vmem [thread:$0]  (!%p808_p5), %s960_s2, 128, %s180_s7, [#allocation7], %s749_s22, %s749_s22, %s750_s29  }
  0x50   : > { %p970_p3 = scmp.ne.s32.totalorder %s966_s19, 0 }
  0x51   : > { %p971_p2 = scmp.ne.s32.totalorder (!%p970_p3), %s965_s18, 0 }
  0x52   : > { %195 = sbr.rel (%p970_p3) target bundleno = 724 (0x2d4), region = 32 }
  0x59   : > { %722 = dma.done.wait (%p971_p2), [#allocation4], 128  }
  0x5a   : > { %724 = vsyncadd (%p971_p2), [#allocation4], 4294967168 }
  0x5b   : > { %726 = dma.done.wait (%p971_p2), [#allocation7], 384  }
  0x5c   : > { %728 = vsyncadd (%p971_p2), [#allocation7], 4294966912  ;;  %p248_p8 = scmp.eq.s32.totalorder %s735_s12, 0  ;;  %v228_v0 = vld [vmem:[#allocation6] sm:$0xff]  ;;  %v229_v1 = vld [vmem:[#allocation6 + $0x8] sm:$0xff] }
  0x5d   : > { %v236_v2 = vsub.f32 1.0, %v228_v0  ;;  %v237_v3 = vsub.f32 1.0, %v229_v1  ;;  %v497_v6 = vld [vmem:[#allocation3] sm:$0xff]   ;;  %v501_v7 = vld [vmem:[#allocation8] sm:$0xff]   ;;  %v752_v26 = vmov (%p248_p8), 0.0  }
  0x5e   : > { %v498_v8 = vunpack.c.l.bf16 %v497_v6  ;;  %v502_v9 = vunpack.c.l.bf16 %v501_v7  ;;  %v499_v10 = vunpack.c.h.bf16 %v497_v6  ;;  %v503_v11 = vunpack.c.h.bf16 %v501_v7  ;;  %254 = vst [vmem:[#allocation2] sm:$0xff] (%p248_p8), %v752_v26  ;;  %255 = vst [vmem:[#allocation2 + $0x8] sm:$0xff] (%p248_p8), %v752_v26 }
  0x5f   : > { %v238_v4 = vadd.f32 1e-08, %v236_v2  ;;  %v239_v5 = vadd.f32 1e-08, %v237_v3  ;;  %256 = vst [vmem:[#allocation2 + $0x10] sm:$0xff] (%p248_p8), %v752_v26  ;;  %257 = vst [vmem:[#allocation2 + $0x18] sm:$0xff] (%p248_p8), %v752_v26 }
  0x60   : > { %v230_v12 = vsub.f32 1.0, %v502_v9  ;;  %v232_v13 = vsub.f32 1.0, %v498_v8  ;;  %v231_v14 = vsub.f32 1.0, %v503_v11  ;;  %v233_v15 = vsub.f32 1.0, %v499_v10  ;;  %258 = vst [vmem:[#allocation2 + $0x20] sm:$0xff] (%p248_p8), %v752_v26  ;;  %259 = vst [vmem:[#allocation2 + $0x28] sm:$0xff] (%p248_p8), %v752_v26 }
  0x61   : > { %587 = vlog2.f32 %v238_v4 }
  0x62   : > { %589 = vlog2.f32 %v239_v5  ;;  %v897_v18 = vmul.f32 %v232_v13, %v230_v12  ;;  %v899_v20 = vmul.f32 %v233_v15, %v231_v14 }
  0x6b   : > { %v588_v16 = vpop.eup %587  ;;  %253 = sbr.rel (!%p248_p8) target bundleno = 114 (0x72), region = 48 }
  0x6c   : > { %v590_v17 = vpop.eup %589  ;;  %v241_v19 = vmul.f32 0.6931472, %v588_v16 }
  0x6d   : > { %v243_v21 = vmul.f32 0.6931472, %v590_v17 }
  0x6e   : > { %v244_v22 = vsub.f32 0.0, %v241_v19 }
  0x6f   : > { %v245_v23 = vsub.f32 0.0, %v243_v21 }
  0x70   : > { %v902_v24 = vmul.f32 %v244_v22, %v897_v18 }
  0x71   : > { %v905_v25 = vmul.f32 %v245_v23, %v899_v20 }
  0x72 PF: > { %p489_p5 = scmp.ne.s32.totalorder %s735_s12, 0 }
  0x73   : > { %v274_v27 = vld [vmem:[#allocation2] sm:$0xff] (!%p489_p5)  ;;  %v275_v28 = vadd.f32 (!%p489_p5), %v499_v10, %v498_v8  ;;  %v264_v29 = vadd.f32 (!%p489_p5), 1e-08, %v228_v0  ;;  %v265_v30 = vadd.f32 (!%p489_p5), 1e-08, %v229_v1  ;;  %v285_v31 = vadd.f32 (!%p489_p5), %v905_v25, %v902_v24  ;;  %v284_v32 = vld [vmem:[#allocation2 + $0x10] sm:$0xff] (!%p489_p5) }
  0x74   : > { %263 = sbr.rel (%p489_p5) target bundleno = 140 (0x8c), region = 52  ;;  %v289_v33 = vld [vmem:[#allocation2 + $0x18] sm:$0xff] (!%p489_p5)  ;;  %v290_v34 = vadd.f32 (!%p489_p5), %v899_v20, %v897_v18  ;;  %v279_v46 = vld [vmem:[#allocation2 + $0x8] sm:$0xff] (!%p489_p5) }
  0x75   : > { %v276_v35 = vadd.f32 (!%p489_p5), %v275_v28, %v274_v27  ;;  %591 = vlog2.f32 (!%p489_p5), %v264_v29  ;;  %v286_v36 = vadd.f32 (!%p489_p5), %v285_v31, %v284_v32 }
  0x76   : > { %593 = vlog2.f32 (!%p489_p5), %v265_v30  ;;  %v291_v37 = vadd.f32 (!%p489_p5), %v290_v34, %v289_v33 }
  0x77   : > { %277 = vst [vmem:[#allocation2] sm:$0xff] (!%p489_p5), %v276_v35  ;;  %287 = vst [vmem:[#allocation2 + $0x10] sm:$0xff] (!%p489_p5), %v286_v36 }
  0x78   : > { %292 = vst [vmem:[#allocation2 + $0x18] sm:$0xff] (!%p489_p5), %v291_v37 }
  0x7f   : > { %v592_v38 = vpop.eup %591 }
  0x80   : > { %v594_v39 = vpop.eup %593  ;;  %v267_v40 = vmul.f32 0.6931472, %v592_v38 }
  0x81   : > { %v269_v41 = vmul.f32 0.6931472, %v594_v39 }
  0x82   : > { %v270_v42 = vsub.f32 0.0, %v267_v40 }
  0x83   : > { %v271_v43 = vsub.f32 0.0, %v269_v41 }
  0x84   : > { %v272_v44 = vmul.f32 %v498_v8, %v270_v42 }
  0x85   : > { %v273_v45 = vmul.f32 %v499_v10, %v271_v43 }
  0x87   : > { %v280_v47 = vadd.f32 %v273_v45, %v272_v44 }
  0x89   : > { %v281_v48 = vadd.f32 %v280_v47, %v279_v46 }
  0x8b   : > { %282 = vst [vmem:[#allocation2 + $0x8] sm:$0xff] %v281_v48 }
  0x8c PF: > { %p490_p10 = scmp.ne.s32.totalorder %s735_s12, 1 }
  0x8d   : > { %v341_v9 = vld [vmem:[#allocation2 + $0x28] sm:$0xff] (!%p490_p10)  ;;  %v334_v10 = vld [vmem:[#allocation2 + $0x20] sm:$0xff] (!%p490_p10) }
  0x8e   : > { %296 = sbr.rel (%p490_p10) target bundleno = 699 (0x2bb), region = 56 }
  0x8f   : > { %v301_v49 = vld [vmem:[#allocation2 + $0x10] sm:$0xff] (!%p490_p10)  ;;  %v382_v15 = vld [vmem:[#allocation2] sm:$0xff] (!%p490_p10) }
  0x90   : > { %302 = vadd.xlane.f32.xlu0 (!%p490_p10), %v301_v49  ;;  %v312_v50 = vld [vmem:[#allocation2 + $0x18] sm:$0xff] (!%p490_p10) }
  0x92   : > { %v351_v51 = vld [vmem:[#allocation2 + $0x8] sm:$0xff] (!%p490_p10) }
  0x93   : > { %352 = vadd.xlane.f32.xlu1 (!%p490_p10), %v351_v51 }
  0x94   : > { %313 = vadd.xlane.f32.xlu0 (!%p490_p10), %v312_v50 }
 0x11d   : > { %v303_v52 = vpop.xlane.xlu0 %302 }
 0x11e   : > { %v304_v53 = vrot.slane %v303_v52, 4 }
 0x120   : > { %v305_v54 = vadd.f32 %v304_v53, %v303_v52  ;;  %v353_v16 = vpop.xlane.xlu1 %352 }
 0x121   : > { %v314_v55 = vpop.xlane.xlu0 %313  ;;  %v354_v17 = vrot.slane %v353_v16, 4 }
 0x122   : > { %v306_v56 = vrot.slane %v305_v54, 2  ;;  %v315_v57 = vrot.slane %v314_v55, 4 }
 0x123   : > { %v355_v19 = vadd.f32 %v354_v17, %v353_v16 }
 0x124   : > { %v316_v58 = vadd.f32 %v315_v57, %v314_v55  ;;  %v307_v59 = vadd.f32 %v306_v56, %v305_v54 }
 0x125   : > { %v356_v21 = vrot.slane %v355_v19, 2 }
 0x126   : > { %v317_v60 = vrot.slane %v316_v58, 2  ;;  %v308_v61 = vrot.slane %v307_v59, 1 }
 0x127   : > { %v357_v22 = vadd.f32 %v356_v21, %v355_v19 }
 0x128   : > { %v309_v62 = vadd.f32 %v308_v61, %v307_v59  ;;  %v318_v63 = vadd.f32 %v317_v60, %v316_v58 }
 0x12a   : > { %504 = vpush %v309_v62  ;;  %v319_v0 = vrot.slane %v318_v63, 1 }
 0x12c   : > { %v320_v1 = vadd.f32 %v319_v0, %v318_v63 }
 0x12e   : > { %506 = vpush %v320_v1 }
 0x15b   : > { %s505_s12 = spop %504 }
 0x15f   : > { %s507_s18 = spop %506 }
 0x160   : > { %v322_v2 = vstv %s507_s18 }
 0x161   : > { %595 = vrcp.f32 %v322_v2 }
 0x16b   : > { %v596_v3 = vpop.eup %595 }
 0x16c   : > { %508 = vpush %v596_v3 }
 0x19d   : > { %s509_s19 = spop %508 }
 0x19e   : > { %s325_s20 = smul.f32 %s509_s19, %s505_s12 }
 0x1a0   : > { %v326_v4 = vstv %s325_s20 }
 0x1a1   : > { %vm331_vm0 = vcmp.gt.f32.partialorder %v902_v24, %v326_v4  ;;  %vm332_vm1 = vcmp.gt.f32.partialorder %v905_v25, %v326_v4 }
 0x1a2   : > { %v335_v5 = vsel %vm331_vm0, %v902_v24, 0.0  ;;  %v336_v6 = vsel %vm332_vm1, %v905_v25, 0.0  ;;  %v342_v7 = vsel %vm331_vm0, %v897_v18, 0.0  ;;  %v343_v8 = vsel %vm332_vm1, %v899_v20, 0.0 }
 0x1a3   : > { %v337_v11 = vadd.f32 %v336_v6, %v335_v5  ;;  %v344_v12 = vadd.f32 %v343_v8, %v342_v7  ;;  %v358_v18 = vrot.slane %v357_v22, 1 }
 0x1a5   : > { %v345_v13 = vadd.f32 %v344_v12, %v341_v9  ;;  %v338_v14 = vadd.f32 %v337_v11, %v334_v10  ;;  %v359_v23 = vadd.f32 %v358_v18, %v357_v22 }
 0x1a7   : > { %346 = vst [vmem:[#allocation2 + $0x28] sm:$0xff] %v345_v13  ;;  %373 = vadd.xlane.f32.xlu0 %v345_v13  ;;  %339 = vst [vmem:[#allocation2 + $0x20] sm:$0xff] %v338_v14  ;;  %362 = vadd.xlane.f32.xlu1 %v338_v14 }
 0x1a8   : > { %510 = vpush %v359_v23 }
 0x1ab   : > { %383 = vadd.xlane.f32.xlu1 %v382_v15 }
 0x1d9   : > { %s511_s30 = spop %510 }
 0x234   : > { %v374_v20 = vpop.xlane.xlu0 %373  ;;  %v363_v24 = vpop.xlane.xlu1 %362 }
 0x235   : > { %v375_v25 = vrot.slane %v374_v20, 4  ;;  %v364_v26 = vrot.slane %v363_v24, 4 }
 0x237   : > { %v376_v27 = vadd.f32 %v375_v25, %v374_v20  ;;  %v365_v28 = vadd.f32 %v364_v26, %v363_v24 }
 0x238   : > { %v384_v29 = vpop.xlane.xlu1 %383 }
 0x239   : > { %v377_v30 = vrot.slane %v376_v27, 2  ;;  %v366_v31 = vrot.slane %v365_v28, 2  ;;  %v385_v32 = vrot.slane %v384_v29, 4 }
 0x23b   : > { %v378_v33 = vadd.f32 %v377_v30, %v376_v27  ;;  %v386_v34 = vadd.f32 %v385_v32, %v384_v29  ;;  %v367_v35 = vadd.f32 %v366_v31, %v365_v28 }
 0x23d   : > { %v387_v36 = vrot.slane %v386_v34, 2  ;;  %v368_v37 = vrot.slane %v367_v35, 1  ;;  %v379_v38 = vrot.slane %v378_v33, 1 }
 0x23f   : > { %v388_v39 = vadd.f32 %v387_v36, %v386_v34  ;;  %v369_v40 = vadd.f32 %v368_v37, %v367_v35  ;;  %v380_v41 = vadd.f32 %v379_v38, %v378_v33 }
 0x241   : > { %512 = vpush %v369_v40  ;;  %v389_v42 = vrot.slane %v388_v39, 1 }
 0x242   : > { %514 = vpush %v380_v41 }
 0x243   : > { %v390_v43 = vadd.f32 %v389_v42, %v388_v39 }
 0x245   : > { %516 = vpush %v390_v43 }
 0x272   : > { %s513_s28 = spop %512 }
 0x273   : > { %s515_s16 = spop %514  ;;  %s371_s4 = sadd.f32 %s513_s28, %s511_s30 }
 0x276   : > { %s517_s22 = spop %516 }
 0x277   : > { %s392_s29 = sadd.f32 %s517_s22, %s515_s16 }
 0x279   : > { %v393_v44 = vstv %s392_s29 }
 0x27a   : > { %597 = vrcp.f32 %v393_v44 }
 0x284   : > { %v598_v45 = vpop.eup %597 }
 0x285   : > { %518 = vpush %v598_v45 }
 0x2b6   : > { %s519_s5 = spop %518 }
 0x2b7   : > { %s396_s6 = smul.f32 %s519_s5, %s371_s4 }
 0x2b9   : > { %v397_v46 = vstv %s396_s6 }
 0x2ba   : > { %398 = vst [vmem:[#allocation9] sm:$0x1] %v397_v46 }
 0x2bb PF: > { %p923_p11 = scmp.eq.s32.totalorder %s479_s17, 1  ;;  %s753_s8 = smov [#allocation9]  }
 0x2bc   : > { %s406_s9 = sshll.u32 %s753_s8, 4  ;;  %s407_s9 = int_to_ptr.vmem [resolvable:$true] %s406_s9 }
 0x2bd   : > { %s683_s10 = scalar_lea.vmem %s407_s9, 16  ;;  %s689_s11 = scalar_lea.vmem %s407_s9, 32 }
 0x2be   : > { %p684_p12 = scmp.ne.s32.totalorder %s407_s9, %s683_s10  ;;  %p690_p0 = scmp.lt.s32.totalorder %s407_s9, %s407_s9 }
 0x2bf   : > { %p691_p1 = scmp.lt.s32.totalorder %s689_s11, %s683_s10 }
 0x2c0   : > { %p685_p13 = pnand %p684_p12, %p923_p11 }
 0x2c1   : > { %p692_p4 = por %p691_p1, %p690_p0 }
 0x2c2   : > { %p686_p6 = pneg %p685_p13 }
 0x2c4   : > { %p693_p7 = pnand %p692_p4, %p686_p6 }
 0x2c6   : > { %696 = shalt.err (!%p693_p7)
}
 0x2c7   : > { %s697_s23 = scalar_lea.hbm %s961_s3, 16 }
 0x2c8   : > { %p698_p9 = scmp.ne.s32.totalorder %s961_s3, %s697_s23  ;;  %p703_p8 = scmp.lt.u32.totalorder %s697_s23, %s961_s3 }
 0x2ca   : > { %p699_p3 = pnand %p698_p9, %p923_p11 }
 0x2cc   : > { %p700_p2 = pneg %p699_p3 }
 0x2ce   : > { %p705_p5 = pnand %p703_p8, %p700_p2 }
 0x2d0   : > { %708 = shalt.err (!%p705_p5)
}
 0x2d1   : > { %533 = dma.vmem_to_hbm [thread:$0]  (%p923_p11), %s407_s9, 16, %s961_s3, [#allocation5]  }
 0x2d2   : > { %730 = dma.done.wait (%p923_p11), [#allocation5], 16  }
 0x2d3   : > { %732 = vsyncadd (%p923_p11), [#allocation5], 4294967280 }
 0x2d4 PF: > { %s16_s14 = sadd.s32 1, %s743_s14   ;;  %s973_s12 = smov %s739_s13 }
 0x2d5   : > { %p13_p10 = scmp.ge.s32.totalorder %s16_s14, 4   ;;  %s974_s13 = smov %s976_s21 }
 0x2d7   :  { %15 = sbr.rel (!%p13_p10) target bundleno = 4 (0x4), region = 102 }
 0x2de   :  { %419 = vsyncpa [#allocation4], 1 }
 0x2df   :  { %421 = vsyncpa [#allocation4 + $0x1], 1 }
 0x2e0   :  { %422 = vsyncpa [#allocation7], 1 }
 0x2e1   :  { %423 = vsyncpa [#allocation5], 1 }
 0x2e2   :  { %425 = vsyncpa [#allocation5 + $0x1], 1 }

</bundles_post_ra>
